<compile_context>
chip_gen: v6e
topology: v6e:2x2x1
jax: 0.10.0
libtpu: 0.0.40
codegen_flags: <defaults>
</compile_context>

<pallas_src>
import functools
import math

import jax
import jax.numpy as jnp
from jax.experimental import pallas as pl
from jax.experimental.pallas import tpu as pltpu


# ----------------------------- kernels ---------------------------------------


def _affine_first_ln_kernel(x_ref, w_ref, b_ref, o_ref, *, eps: float, inv_d: float,
                            has_bias: bool):
    """Row-wise path: one logical row per lane-row. x_ref: (TILE_R, D); w/b: (1, D)."""
    x = x_ref[...].astype(jnp.float32)
    w = w_ref[...].astype(jnp.float32)
    y = x * w
    if has_bias:
        y = y + b_ref[...].astype(jnp.float32)

    # Two-pass (centered) statistics: robust against cancellation when bias shifts the mean.
    mean = jnp.sum(y, axis=-1, keepdims=True) * inv_d
    c = y - mean
    var = jnp.sum(c * c, axis=-1, keepdims=True) * inv_d
    o_ref[...] = (c * jax.lax.rsqrt(var + eps)).astype(o_ref.dtype)


def _affine_first_ln_folded_kernel(x_ref, w_ref, b_ref, seg_ref, segT_ref, o_ref, *,
                                   eps: float, inv_d: float, has_bias: bool):
    """Lane-dense small-D path: g = 128 // D logical rows folded per lane-row.

    x_ref: (TILE_R, g*D). seg_ref: (g*D, g) block-diagonal ones; segT_ref: (g, g*D).
    Per-segment sums / broadcast-back run on the otherwise-idle MXU.
    """
    x = x_ref[...].astype(jnp.float32)
    w = w_ref[...].astype(jnp.float32)
    y = x * w
    if has_bias:
        y = y + b_ref[...].astype(jnp.float32)

    seg = seg_ref[...]
    segT = segT_ref[...]
    hi = jax.lax.Precision.HIGHEST  # ones-matrix sums are exact at >= bf16x3

    s1 = jnp.dot(y, seg, preferred_element_type=jnp.float32, precision=hi)        # (R, g)
    mean = jnp.dot(s1 * inv_d, segT, preferred_element_type=jnp.float32,
                   precision=hi)                                                   # (R, g*D)
    c = y - mean
    s2 = jnp.dot(c * c, seg, preferred_element_type=jnp.float32, precision=hi)     # (R, g)
    var = jnp.dot(s2 * inv_d, segT, preferred_element_type=jnp.float32,
                  precision=hi)                                                    # (R, g*D)

    o_ref[...] = (c * jax.lax.rsqrt(var + eps)).astype(o_ref.dtype)


# ----------------------------- sizing helpers ---------------------------------


def _round_up(n: int, m: int) -> int:
    return ((n + m - 1) // m) * m


def _sublane_multiple(dtype) -> int:
    # Sub-32-bit dtypes pack along sublanes: 8 rows f32, 16 rows bf16, 32 rows int8/fp8.
    itemsize = jnp.dtype(dtype).itemsize
    return max(8, 32 // itemsize)


def _vmem_capacity_bytes() -> int:
    try:
        return int(pltpu.get_tpu_info().vmem_capacity_bytes)
    except Exception:
        return 64 * 1024 * 1024  # conservative fallback (v7x per-TensorCore VMEM)


def _pick_tile_rows(num_rows: int, d: int, dtype, tile_budget_bytes: int,
                    per_tile_target_bytes: int = 8 * 1024 * 1024) -> int:
    """Largest row tile s.t. double-buffered in+out tiles + f32 intermediate fit the budget."""
    sub = _sublane_multiple(dtype)
    item = jnp.dtype(dtype).itemsize
    # VMEM model per row of tile: 2x in + 2x out pipeline buffers (4*item bytes/elem)
    # plus ~1.5x one f32 intermediate (6 bytes/elem) for the centered y.
    per_row_bytes = d * (4 * item + 6)
    rows_by_vmem = max(sub, tile_budget_bytes // per_row_bytes)
    rows_by_tile = max(sub, per_tile_target_bytes // (d * item))
    rows = min(rows_by_vmem, rows_by_tile)
    # Guarantee >= 2 grid steps whenever possible (v7x has 2 TCs; cheap on v5e/v6e).
    if num_rows > 2 * sub:
        rows = min(rows, _round_up(-(-num_rows // 2), sub))
    rows = min(rows, _round_up(num_rows, sub))
    rows = max(sub, (rows // sub) * sub)
    return rows


# ----------------------------- public wrapper ---------------------------------


def affine_first_layer_norm(x, weight, bias=None, eps: float = 1e-5,
                            tile_rows: int | None = None):
    """x: (..., D); weight, bias: (D,). Matches AffineFirstLayerNorm.forward semantics."""
    orig_shape = x.shape
    D = orig_shape[-1]
    R = math.prod(orig_shape[:-1]) if len(orig_shape) > 1 else 1

    has_bias = bias is not None
    b_arr = bias if has_bias else jnp.zeros((D,), dtype=weight.dtype)

    # Lane-density fix for small D: fold g = 128 // D logical rows into one 128-lane row.
    g = 1
    if D < 128 and 128 % D == 0:
        g_try = 128 // D
        if g_try > 1 and R % g_try == 0:
            g = g_try
    Rf, Df = R // g, g * D

    x2 = x.reshape(Rf, Df)                                   # contiguous => free reshape
    wf = jnp.tile(weight.reshape(-1), g).reshape(1, Df)
    bf = jnp.tile(b_arr.reshape(-1), g).reshape(1, Df)

    cap = _vmem_capacity_bytes()
    tile_budget = (cap * 3) // 8                             # ~24 MiB v7x, ~48 MiB v5e/v6e
    sub = _sublane_multiple(x.dtype)
    if tile_rows is None:
        tile_rows = _pick_tile_rows(Rf, Df, x.dtype, tile_budget)
    else:
        tile_rows = max(sub, (min(tile_rows, _round_up(Rf, sub)) // sub) * sub)

    grid = (pl.cdiv(Rf, tile_rows),)                         # partial last block is masked

    # Explicit VMEM limit: double-buffered in/out tiles + ~1.5x f32 intermediate + params.
    item = jnp.dtype(x.dtype).itemsize
    tile_bytes = tile_rows * Df * item
    needed = (4 * tile_bytes                                  # 2x in + 2x out pipeline bufs
              + (3 * tile_rows * Df * 4) // 2                 # ~1.5x f32 intermediate
              + 8 * Df * (item + 4 * max(g, 1))               # params / seg maps (x2 bufs)
              + (2 << 20))                                    # headroom
    vmem_limit = int(min(max(needed, 16 << 20), (cap * 9) // 10))

    out_shape = jax.ShapeDtypeStruct((Rf, Df), x.dtype)
    compiler_params = pltpu.CompilerParams(
        dimension_semantics=("parallel",),
        vmem_limit_bytes=vmem_limit,
    )
    x_spec = pl.BlockSpec((tile_rows, Df), lambda i: (i, 0))
    p_spec = pl.BlockSpec((1, Df), lambda i: (0, 0))          # resident (1, D) params
    o_spec = pl.BlockSpec((tile_rows, Df), lambda i: (i, 0))

    if g == 1:
        out2 = pl.pallas_call(
            functools.partial(_affine_first_ln_kernel, eps=float(eps),
                              inv_d=1.0 / float(D), has_bias=has_bias),
            out_shape=out_shape,
            grid_spec=pltpu.PrefetchScalarGridSpec(
                num_scalar_prefetch=0,
                grid=grid,
                in_specs=[x_spec, p_spec, p_spec],
                out_specs=o_spec,
            ),
            compiler_params=compiler_params,
        )(x2, wf, bf)
    else:
        # Block-diagonal ones: lane j belongs to segment j // D.
        seg = (jnp.arange(Df, dtype=jnp.int32)[:, None] // D
               == jnp.arange(g, dtype=jnp.int32)[None, :]).astype(jnp.float32)   # (Df, g)
        segT = jnp.transpose(seg)                                                  # (g, Df)
        out2 = pl.pallas_call(
            functools.partial(_affine_first_ln_folded_kernel, eps=float(eps),
                              inv_d=1.0 / float(D), has_bias=has_bias),
            out_shape=out_shape,
            grid_spec=pltpu.PrefetchScalarGridSpec(
                num_scalar_prefetch=0,
                grid=grid,
                in_specs=[
                    x_spec, p_spec, p_spec,
                    pl.BlockSpec((Df, g), lambda i: (0, 0)),
                    pl.BlockSpec((g, Df), lambda i: (0, 0)),
                ],
                out_specs=o_spec,
            ),
            compiler_params=compiler_params,
        )(x2, wf, bf, seg, segT)

    return out2.reshape(orig_shape)


# ----------------------------- reference & demo -------------------------------


def _reference(x, weight, bias, eps=1e-5):
    y = x.astype(jnp.float32) * weight.astype(jnp.float32) + bias.astype(jnp.float32)
    mean = jnp.mean(y, axis=-1, keepdims=True)
    var = jnp.mean((y - mean) ** 2, axis=-1, keepdims=True)
    return ((y - mean) / jnp.sqrt(var + eps)).astype(x.dtype)


if __name__ == "__main__":
    key = jax.random.PRNGKey(0)
    kx, kw, kb = jax.random.split(key, 3)

    # Small shapes consistent with the module: affine_shape = normalized_shape = (D,).
    B, L, D = 2, 16, 32
    eps = 1e-5

    x = jax.random.normal(kx, (B, L, D), dtype=jnp.float32)
    # Non-trivial affine params (module default after reset_parameters() is ones/zeros).
    weight = 1.0 + 0.1 * jax.random.normal(kw, (D,), dtype=jnp.float32)
    bias = 0.1 * jax.random.normal(kb, (D,), dtype=jnp.float32)

    # Lane-dense folded path (R % (128//D) == 0).
    out = jax.block_until_ready(affine_first_layer_norm(x, weight, bias, eps=eps))
    ref = _reference(x, weight, bias, eps=eps)
    assert out.shape == (B, L, D)
    assert jnp.allclose(out, ref, atol=3e-5, rtol=3e-5), "mismatch vs reference (folded path)"

    # Non-divisible row count: no fold, partial (masked) last grid block, no pad/slice.
    B2, L2 = 3, 37
    x2 = jax.random.normal(kx, (B2, L2, D), dtype=jnp.float32)
    out2 = jax.block_until_ready(affine_first_layer_norm(x2, weight, bias, eps=eps))
    ref2 = _reference(x2, weight, bias, eps=eps)
    assert out2.shape == (B2, L2, D)
    assert jnp.allclose(out2, ref2, atol=3e-5, rtol=3e-5), "mismatch vs reference (partial-block path)"

    print("KERNEL_OK")
</pallas_src>

<mosaic_0001>
module attributes {stable_mosaic.version = 11 : i64} {
  func.func @_affine_first_ln_folded_kernel(%arg0: i32, %arg1: memref<8x128xf32, #tpu.memory_space<vmem>>, %arg2: memref<1x128xf32, #tpu.memory_space<vmem>>, %arg3: memref<1x128xf32, #tpu.memory_space<vmem>>, %arg4: memref<128x4xf32, #tpu.memory_space<vmem>>, %arg5: memref<4x128xf32, #tpu.memory_space<vmem>>, %arg6: memref<8x128xf32, #tpu.memory_space<vmem>>) attributes {dimension_semantics = [#tpu.dimension_semantics<parallel>], iteration_bounds = array<i64: 1>, scalar_prefetch = 0 : i64, scratch_operands = 0 : i64, tpu.core_type = #tpu.core_type<tc>, window_params = [{transform_indices = @transform_0, window_bounds = array<i64: 8, 128>}, {pipeline_mode = #tpu.pipeline_mode<synchronous>, transform_indices = @transform_1, window_bounds = array<i64: 1, 128>}, {pipeline_mode = #tpu.pipeline_mode<synchronous>, transform_indices = @transform_2, window_bounds = array<i64: 1, 128>}, {pipeline_mode = #tpu.pipeline_mode<synchronous>, transform_indices = @transform_3, window_bounds = array<i64: 128, 4>}, {pipeline_mode = #tpu.pipeline_mode<synchronous>, transform_indices = @transform_4, window_bounds = array<i64: 4, 128>}, {transform_indices = @transform_5, window_bounds = array<i64: 8, 128>}]} {
    %c0 = arith.constant 0 : index
    %c0_0 = arith.constant 0 : index
    %0 = vector.load %arg1[%c0, %c0_0] : memref<8x128xf32, #tpu.memory_space<vmem>>, vector<8x128xf32>
    %c0_1 = arith.constant 0 : index
    %c0_2 = arith.constant 0 : index
    %1 = vector.load %arg2[%c0_1, %c0_2] : memref<1x128xf32, #tpu.memory_space<vmem>>, vector<1x128xf32>
    %2 = vector.broadcast %1 : vector<1x128xf32> to vector<8x128xf32>
    %3 = arith.mulf %0, %2 : vector<8x128xf32>
    %c0_3 = arith.constant 0 : index
    %c0_4 = arith.constant 0 : index
    %4 = vector.load %arg3[%c0_3, %c0_4] : memref<1x128xf32, #tpu.memory_space<vmem>>, vector<1x128xf32>
    %5 = vector.broadcast %4 : vector<1x128xf32> to vector<8x128xf32>
    %6 = arith.addf %3, %5 : vector<8x128xf32>
    %c0_5 = arith.constant 0 : index
    %c0_6 = arith.constant 0 : index
    %7 = vector.load %arg4[%c0_5, %c0_6] : memref<128x4xf32, #tpu.memory_space<vmem>>, vector<128x4xf32>
    %c0_7 = arith.constant 0 : index
    %c0_8 = arith.constant 0 : index
    %8 = vector.load %arg5[%c0_7, %c0_8] : memref<4x128xf32, #tpu.memory_space<vmem>>, vector<4x128xf32>
    %cst = arith.constant dense<0.000000e+00> : vector<8x4xf32>
    %9 = tpu.matmul %6, %7, %cst {dimension_numbers = #tpu.dot_dimension_numbers<[1], [0], [0], [1], [0, 0, 1, 1], [], []>, precision = #tpu.contract_precision<fp32>} : vector<8x128xf32>, vector<128x4xf32>, vector<8x4xf32> -> vector<8x4xf32>
    %cst_9 = arith.constant 3.125000e-02 : f32
    %10 = vector.broadcast %cst_9 : f32 to vector<8x4xf32>
    %11 = arith.mulf %9, %10 : vector<8x4xf32>
    %cst_10 = arith.constant dense<0.000000e+00> : vector<8x128xf32>
    %12 = tpu.matmul %11, %8, %cst_10 {dimension_numbers = #tpu.dot_dimension_numbers<[1], [0], [0], [1], [0, 0, 1, 1], [], []>, precision = #tpu.contract_precision<fp32>} : vector<8x4xf32>, vector<4x128xf32>, vector<8x128xf32> -> vector<8x128xf32>
    %13 = arith.subf %6, %12 : vector<8x128xf32>
    %14 = arith.mulf %13, %13 : vector<8x128xf32>
    %cst_11 = arith.constant dense<0.000000e+00> : vector<8x4xf32>
    %15 = tpu.matmul %14, %7, %cst_11 {dimension_numbers = #tpu.dot_dimension_numbers<[1], [0], [0], [1], [0, 0, 1, 1], [], []>, precision = #tpu.contract_precision<fp32>} : vector<8x128xf32>, vector<128x4xf32>, vector<8x4xf32> -> vector<8x4xf32>
    %cst_12 = arith.constant 3.125000e-02 : f32
    %16 = vector.broadcast %cst_12 : f32 to vector<8x4xf32>
    %17 = arith.mulf %15, %16 : vector<8x4xf32>
    %cst_13 = arith.constant dense<0.000000e+00> : vector<8x128xf32>
    %18 = tpu.matmul %17, %8, %cst_13 {dimension_numbers = #tpu.dot_dimension_numbers<[1], [0], [0], [1], [0, 0, 1, 1], [], []>, precision = #tpu.contract_precision<fp32>} : vector<8x4xf32>, vector<4x128xf32>, vector<8x128xf32> -> vector<8x128xf32>
    %cst_14 = arith.constant 9.99999974E-6 : f32
    %19 = vector.broadcast %cst_14 : f32 to vector<8x128xf32>
    %20 = arith.addf %18, %19 : vector<8x128xf32>
    %21 = math.rsqrt %20 : vector<8x128xf32>
    %22 = arith.mulf %13, %21 : vector<8x128xf32>
    %c0_15 = arith.constant 0 : index
    %c0_16 = arith.constant 0 : index
    %23 = vector.load %arg6[%c0_15, %c0_16] : memref<8x128xf32, #tpu.memory_space<vmem>>, vector<8x128xf32>
    tpu.vector_store %arg6[%c0_15, %c0_16], %22 {strides = array<i32>} : memref<8x128xf32, #tpu.memory_space<vmem>>, vector<8x128xf32>,
    return
  }
  func.func @transform_0(%arg0: i32) -> (i32, i32) {
    %c0_i32 = arith.constant 0 : i32
    %c0_i32_0 = arith.constant 0 : i32
    return %arg0, %c0_i32 : i32, i32
  }
  func.func @transform_1(%arg0: i32) -> (i32, i32) {
    %c0_i32 = arith.constant 0 : i32
    %c0_i32_0 = arith.constant 0 : i32
    %c0_i32_1 = arith.constant 0 : i32
    return %c0_i32, %c0_i32_0 : i32, i32
  }
  func.func @transform_2(%arg0: i32) -> (i32, i32) {
    %c0_i32 = arith.constant 0 : i32
    %c0_i32_0 = arith.constant 0 : i32
    %c0_i32_1 = arith.constant 0 : i32
    return %c0_i32, %c0_i32_0 : i32, i32
  }
  func.func @transform_3(%arg0: i32) -> (i32, i32) {
    %c0_i32 = arith.constant 0 : i32
    %c0_i32_0 = arith.constant 0 : i32
    %c0_i32_1 = arith.constant 0 : i32
    return %c0_i32, %c0_i32_0 : i32, i32
  }
  func.func @transform_4(%arg0: i32) -> (i32, i32) {
    %c0_i32 = arith.constant 0 : i32
    %c0_i32_0 = arith.constant 0 : i32
    %c0_i32_1 = arith.constant 0 : i32
    return %c0_i32, %c0_i32_0 : i32, i32
  }
  func.func @transform_5(%arg0: i32) -> (i32, i32) {
    %c0_i32 = arith.constant 0 : i32
    %c0_i32_0 = arith.constant 0 : i32
    return %arg0, %c0_i32 : i32, i32
  }
}

</mosaic_0001>

<bundles_post_ra>
// kernel: tpu_custom_call.1
= control target key start
LH: loop header
LB: loop body
LE: loop exit
PB: predicated region body
PF: predicated region fallthrough
CT: control target
= control target key end

     0   :  { %v3822_v3 = vmov 0.0   ;;  %vm2999_vm0 = vmmov 0   ;;  %s3792_s0 = inlined_call_operand.vmem [shape: f32[8,128], index: 0, kind: input, shape index: {}]   ;;  %s3793_s1 = inlined_call_operand.vmem [shape: f32[1,128], index: 1, kind: input, shape index: {}]   ;;  %s3794_s2 = inlined_call_operand.vmem [shape: f32[1,128], index: 2, kind: input, shape index: {}]   ;;  %s3795_s3 = inlined_call_operand.vmem [shape: f32[128,4], index: 3, kind: input, shape index: {}]   ;;  %s3796_s4 = inlined_call_operand.vmem [shape: f32[4,128], index: 4, kind: input, shape index: {}]   ;;  %s3797_s5 = inlined_call_operand.hbm [shape: f32[8,128], index: 5, kind: output, shape index: {}]  }
   0x1   :  { %v53_v0 = vld [vmem:[%s3795_s3 + $0x78] sm:$0xff]  ;;  %v52_v1 = vld [vmem:[%s3795_s3 + $0x70] sm:$0xff]  ;;  %v51_v2 = vld [vmem:[%s3795_s3 + $0x68] sm:$0xff]  ;;  %2491 = vmatprep.subr.mxu0 %v3822_v3  ;;  %2526 = vmatprep.subr.mxu1 %v3822_v3 }
   0x2   :  { %v3041_v4 = vand.u32 4294901760, %v53_v0  ;;  %v3043_v5 = vand.u32 4294901760, %v52_v1  ;;  %v3045_v6 = vand.u32 4294901760, %v51_v2  ;;  %v50_v7 = vld [vmem:[%s3795_s3 + $0x60] sm:$0xff]  ;;  %v49_v8 = vld [vmem:[%s3795_s3 + $0x58] sm:$0xff]  ;;  %v48_v9 = vld [vmem:[%s3795_s3 + $0x50] sm:$0xff]  ;;  %2523 = vmatprep.mubr.msk.f32.mxu0 %vm2999_vm0, %v3822_v3  ;;  %2558 = vmatprep.mubr.msk.f32.mxu1 %vm2999_vm0, %v3822_v3 }
   0x3   :  { %v3057_v10 = vand.u32 4294901760, %v50_v7  ;;  %v3059_v11 = vand.u32 4294901760, %v49_v8  ;;  %v3061_v12 = vand.u32 4294901760, %v48_v9  ;;  %v47_v13 = vld [vmem:[%s3795_s3 + $0x48] sm:$0xff]  ;;  %v46_v14 = vld [vmem:[%s3795_s3 + $0x40] sm:$0xff]  ;;  %v45_v19 = vld [vmem:[%s3795_s3 + $0x38] sm:$0xff] }
   0x4   :  { %2492 = vmatpush3.msra.mxu0 %v3041_v4  ;;  %v3075_v15 = vsub.f32 %v53_v0, %v3041_v4  ;;  %v3078_v16 = vsub.f32 %v52_v1, %v3043_v5  ;;  %v3080_v17 = vand.u32 4294901760, %v47_v13  ;;  %v3083_v18 = vsub.f32 %v51_v2, %v3045_v6  ;;  %v44_v26 = vld [vmem:[%s3795_s3 + $0x30] sm:$0xff]  ;;  %v43_v34 = vld [vmem:[%s3795_s3 + $0x28] sm:$0xff] }
   0x5   :  { %2493 = vmatprep.subr.mxu0 %v3822_v3  ;;  %v3090_v20 = vsub.f32 %v50_v7, %v3057_v10  ;;  %v3093_v21 = vsub.f32 %v49_v8, %v3059_v11  ;;  %v3105_v25 = vand.u32 4294901760, %v46_v14  ;;  %v3114_v28 = vand.u32 4294901760, %v45_v19 }
   0x6   :  { %2494 = vmatpush3.msra.mxu0 %v3043_v5  ;;  %v3097_v22 = vand.u32 4294901760, %v3075_v15  ;;  %v3100_v23 = vand.u32 4294901760, %v3078_v16  ;;  %v3103_v24 = vand.u32 4294901760, %v3083_v18  ;;  %v3120_v30 = vsub.f32 %v48_v9, %v3061_v12 }
   0x7   :  { %2495 = vmatprep.subr.mxu0 %v3822_v3  ;;  %v3112_v27 = vand.u32 4294901760, %v3090_v20  ;;  %v3117_v29 = vand.u32 4294901760, %v3093_v21  ;;  %v3133_v35 = vsub.f32 %v47_v13, %v3080_v17 }
   0x8   :  { %3825 = vst [vmem:[#allocation5_spill] sm:$0xff] %v3097_v22  ;;  %3826 = vst [vmem:[#allocation6_spill] sm:$0xff] %v3100_v23  ;;  %2496 = vmatpush3.msra.mxu0 %v3045_v6  ;;  %v150_v31 = vsub.f32 %v3075_v15, %v3097_v22  ;;  %v157_v32 = vsub.f32 %v3078_v16, %v3100_v23  ;;  %v164_v33 = vsub.f32 %v3083_v18, %v3103_v24 }
   0x9   :  { %3827 = vst [vmem:[#allocation7_spill] sm:$0xff] %v3103_v24  ;;  %3828 = vst [vmem:[#allocation8_spill] sm:$0xff] %v3112_v27 }
   0xa   :  { %3829 = vst [vmem:[#allocation9_spill] sm:$0xff] %v3117_v29 }
   0xb   :  { %10 = vsyncpa [#allocation3], 0  ;;  %2497 = vmatprep.subr.mxu0 %v3822_v3  ;;  %v3136_v36 = vand.u32 4294901760, %v44_v26  ;;  %v3139_v37 = vand.u32 4294901760, %v150_v31  ;;  %v3141_v38 = vand.u32 4294901760, %v157_v32  ;;  %v171_v39 = vsub.f32 %v3090_v20, %v3112_v27  ;;  %v42_v41 = vld [vmem:[%s3795_s3 + $0x20] sm:$0xff] }
   0xc   :  { %2498 = vmatpush3.msra.mxu0 %v3057_v10  ;;  %v3146_v40 = vand.u32 4294901760, %v3120_v30  ;;  %v3152_v42 = vand.u32 4294901760, %v43_v34  ;;  %v3155_v43 = vsub.f32 %v46_v14, %v3105_v25  ;;  %v3159_v44 = vand.u32 4294901760, %v164_v33  ;;  %v21_v48 = vld [vmem:[%s3792_s0] sm:$0xff]  ;;  %v41_v51 = vld [vmem:[%s3795_s3 + $0x18] sm:$0xff]  ;;  %v40_v55 = vld [vmem:[%s3795_s3 + $0x10] sm:$0xff] }
   0xd   :  { %2499 = vmatprep.subr.mxu0 %v3822_v3  ;;  %2527 = vmatpush3.msra.mxu1 %v3139_v37  ;;  %v178_v45 = vsub.f32 %v3093_v21, %v3117_v29  ;;  %v3164_v46 = vand.u32 4294901760, %v3133_v35  ;;  %v3167_v47 = vsub.f32 %v45_v19, %v3114_v28  ;;  %v2261_v49 = vld [vmem:[%s3793_s1] ss:$0 sm:$0xff]  ;;  %v3177_v50 = vand.u32 4294901760, %v42_v41  ;;  %v39_v1 = vld [vmem:[%s3795_s3 + $0x8] sm:$0xff] }
   0xe   :  { %3830 = vst [vmem:[#allocation10_spill] sm:$0xff] %v3146_v40  ;;  %2500 = vmatpush3.msra.mxu0 %v3059_v11  ;;  %2528 = vmatprep.subr.mxu1 %v3822_v3  ;;  %v3184_v52 = vand.u32 4294901760, %v171_v39  ;;  %v185_v53 = vsub.f32 %v3120_v30, %v3146_v40  ;;  %v3189_v54 = vand.u32 4294901760, %v3155_v43  ;;  %v3195_v56 = vsub.f32 %v44_v26, %v3136_v36  ;;  %v2262_v57 = vld [vmem:[%s3794_s2] ss:$0 sm:$0xff] }
   0xf   :  { %3831 = vst [vmem:[#allocation11_spill] sm:$0xff] %v3164_v46  ;;  %2501 = vmatprep.subr.mxu0 %v3822_v3  ;;  %2529 = vmatpush3.msra.mxu1 %v3141_v38  ;;  %v3203_v58 = vand.u32 4294901760, %v3167_v47  ;;  %v29_v59 = vmul.f32 %v2261_v49, %v21_v48  ;;  %v3207_v60 = vand.u32 4294901760, %v178_v45  ;;  %v192_v61 = vsub.f32 %v3133_v35, %v3164_v46  ;;  %v38_v13 = vld [vmem:[%s3795_s3] sm:$0xff] }
  0x10   :  { %2502 = vmatpush3.msra.mxu0 %v3061_v12  ;;  %3832 = vst [vmem:[#allocation12_spill] sm:$0xff] %v3184_v52  ;;  %3833 = vst [vmem:[#allocation13_spill] sm:$0xff] %v3189_v54  ;;  %2530 = vmatprep.subr.mxu1 %v3822_v3  ;;  %v3211_v62 = vand.u32 4294901760, %v41_v51  ;;  %v3214_v63 = vsub.f32 %v43_v34, %v3152_v42  ;;  %v3218_v0 = vand.u32 4294901760, %v40_v55  ;;  %v3227_v7 = vand.u32 4294901760, %v185_v53 }
  0x11   :  { %2503 = vmatprep.subr.mxu0 %v3822_v3  ;;  %3834 = vst [vmem:[#allocation14_spill] sm:$0xff] %v3203_v58  ;;  %2531 = vmatpush3.msra.mxu1 %v3159_v44  ;;  %3835 = vst [vmem:[#allocation15_spill] sm:$0xff] %v3207_v60  ;;  %v3223_v2 = vadd.f32 %v2262_v57, %v29_v59  ;;  %v199_v8 = vsub.f32 %v3155_v43, %v3189_v54  ;;  %v3232_v9 = vand.u32 4294901760, %v3195_v56  ;;  %vm701_vm1 = vcmask 1043456  }
  0x12   :  { %2504 = vmatpush3.msra.mxu0 %v3080_v17  ;;  %2532 = vmatprep.subr.mxu1 %v3822_v3  ;;  %3837 = vst [vmem:[#allocation17_spill] sm:$0xff] %v3227_v7  ;;  %v3238_v14 = vsub.f32 %v42_v41, %v3177_v50  ;;  %v206_v19 = vsub.f32 %v3167_v47, %v3203_v58  ;;  %v3249_v31 = vand.u32 4294901760, %v192_v61  ;;  %v3251_v32 = vand.u32 4294901760, %v39_v1 }
  0x13   :  { %2505 = vmatprep.subr.mxu0 %v3822_v3  ;;  %3836 = vst [vmem:[#allocation16_spill] sm:$0xff] %v3223_v2  ;;  %2533 = vmatpush3.msra.mxu1 %v3184_v52  ;;  %3838 = vst [vmem:[#allocation18_spill] sm:$0xff] %v3232_v9  ;;  %v3245_v26 = vand.u32 4294901760, %v3223_v2  ;;  %v3254_v33 = vand.u32 4294901760, %v3214_v63  ;;  %v3257_v34 = vsub.f32 %v41_v51, %v3211_v62  ;;  %v3261_v39 = vand.u32 4294901760, %v38_v13 }
  0x14   :  { %2506 = vmatpush3.msra.mxu0 %v3105_v25  ;;  %2534 = vmatprep.subr.mxu1 %v3822_v3  ;;  %3839 = vst [vmem:[#allocation19_spill] sm:$0xff] %v3249_v31  ;;  %v3269_v45 = vand.u32 4294901760, %v199_v8  ;;  %v213_v48 = vsub.f32 %v3195_v56, %v3232_v9  ;;  %v3274_v49 = vand.u32 4294901760, %v3238_v14  ;;  %v3277_v51 = vsub.f32 %v40_v55, %v3218_v0 }
  0x15   :  { %2507 = vmatprep.subr.mxu0 %v3822_v3  ;;  %2535 = vmatpush3.msra.mxu1 %v3207_v60  ;;  %3840 = vst [vmem:[#allocation20_spill] sm:$0xff] %v3254_v33  ;;  %v3265_v41 = vsub.f32 %v3223_v2, %v3245_v26  ;;  %v3281_v53 = vand.u32 4294901760, %v206_v19  ;;  %v220_v57 = vsub.f32 %v3214_v63, %v3254_v33  ;;  %v3289_v61 = vand.u32 4294901760, %v3257_v34 }
  0x16   :  { %2508 = vmatpush3.msra.mxu0 %v3114_v28  ;;  %2536 = vmatprep.subr.mxu1 %v3822_v3  ;;  %3841 = vst [vmem:[#allocation21_spill] sm:$0xff] %v3269_v45  ;;  %3842 = vst [vmem:[#allocation22_spill] sm:$0xff] %v3274_v49  ;;  %v3292_v55 = vsub.f32 %v39_v1, %v3251_v32  ;;  %v3298_v8 = vand.u32 4294901760, %v213_v48  ;;  %v227_v19 = vsub.f32 %v3238_v14, %v3274_v49  ;;  %vm697_vm2 = vcmask 31744  }
  0x17   :  { %2509 = vmatprep.subr.mxu0 %v3822_v3  ;;  %2537 = vmatpush3.msra.mxu1 %v3227_v7  ;;  %3843 = vst [vmem:[#allocation23_spill] sm:$0xff] %v3281_v53  ;;  %3844 = vst [vmem:[#allocation24_spill] sm:$0xff] %v3289_v61  ;;  %v3303_v59 = vand.u32 4294901760, %v3277_v51  ;;  %v3306_v2 = vsub.f32 %v38_v13, %v3261_v39  ;;  %v3312_v1 = vand.u32 4294901760, %v220_v57  ;;  %v3847_v48 = vand.u32 4294901760, %v3265_v41 }
  0x18   :  { %2510 = vmatpush3.msra.mxu0 %v3136_v36  ;;  %2538 = vmatprep.subr.mxu1 %v3822_v3  ;;  %3845 = vst [vmem:[#allocation25_spill] sm:$0xff] %v3298_v8  ;;  %v3320_v13 = vand.u32 4294901760, %v3292_v55  ;;  %v3326_v57 = vand.u32 4294901760, %v227_v19 }
  0x19   :  { %2511 = vmatprep.subr.mxu0 %v3822_v3  ;;  %2539 = vmatpush3.msra.mxu1 %v3249_v31  ;;  %3846 = vst [vmem:[#allocation26_spill] sm:$0xff] %v3303_v59  ;;  %v234_v31 = vsub.f32 %v3257_v34, %v3289_v61 }
  0x1a   :  { %2512 = vmatpush3.msra.mxu0 %v3152_v42  ;;  %2540 = vmatprep.subr.mxu1 %v3822_v3  ;;  %3848 = vst [vmem:[#allocation27_spill] sm:$0xff] %v3320_v13  ;;  %v248_v19 = vsub.f32 %v3292_v55, %v3320_v13 }
  0x1b   :  { %2513 = vmatprep.subr.mxu0 %v3822_v3  ;;  %2541 = vmatpush3.msra.mxu1 %v3269_v45  ;;  %v139_v45 = vsub.f32 %v3265_v41, %v3847_v48  ;;  %v3331_v48 = vand.u32 4294901760, %v3306_v2  ;;  %v3337_v60 = vand.u32 4294901760, %v234_v31 }
  0x1c   :  { %2514 = vmatpush3.msra.mxu0 %v3177_v50  ;;  %2542 = vmatprep.subr.mxu1 %v3822_v3  ;;  %v3352_v31 = vand.u32 4294901760, %v248_v19 }
  0x1d   :  { %2515 = vmatprep.subr.mxu0 %v3822_v3  ;;  %2543 = vmatpush3.msra.mxu1 %v3281_v53  ;;  %v241_v53 = vsub.f32 %v3277_v51, %v3303_v59  ;;  %3849 = vst [vmem:[#allocation28_spill] sm:$0xff] %v3331_v48  ;;  %v140_v7 = vand.u32 4294901760, %v139_v45  ;;  %v255_v52 = vsub.f32 %v3306_v2, %v3331_v48 }
  0x1e   :  { %2516 = vmatpush3.msra.mxu0 %v3211_v62  ;;  %2544 = vmatprep.subr.mxu1 %v3822_v3 }
  0x1f   :  { %2517 = vmatprep.subr.mxu0 %v3822_v3  ;;  %2545 = vmatpush3.msra.mxu1 %v3298_v8  ;;  %v3345_v8 = vand.u32 4294901760, %v241_v53  ;;  %v3358_v45 = vand.u32 4294901760, %v255_v52  ;;  %v3850_v52 = vand.u32 4294901760, %v3265_v41 }
  0x20   :  { %2518 = vmatpush3.msra.mxu0 %v3218_v0  ;;  %2546 = vmatprep.subr.mxu1 %v3822_v3 }
  0x21   :  { %2519 = vmatprep.subr.mxu0 %v3822_v3  ;;  %2547 = vmatpush3.msra.mxu1 %v3312_v1 }
  0x22   :  { %2520 = vmatpush3.msra.mxu0 %v3251_v32  ;;  %2548 = vmatprep.subr.mxu1 %v3822_v3 }
  0x23   :  { %2521 = vmatprep.subr.mxu0 %v3822_v3  ;;  %2549 = vmatpush3.msra.mxu1 %v3326_v57 }
  0x24   :  { %2522 = vmatpush3.msra.mxu0 %v3261_v39  ;;  %2550 = vmatprep.subr.mxu1 %v3822_v3 }
  0x25   :  { %2561 = vmatprep.subr.mxu0 %v3822_v3  ;;  %2524 = vmatmul.mubr.f32.vlgmr.msra.gmra.mxu0 %v140_v7  ;;  %v54_v7 = vld [vmem:[%s3796_s4] sm:$0xf]  ;;  %s3000_s4 = smov [#allocation2]  }
  0x26   :  { %2551 = vmatpush3.msra.mxu1 %v3337_v60  ;;  %2562 = vmatpush3.msra.mxu0 %v3075_v15  ;;  %s2253_s29 = sshll.u32 %s3000_s4, 4  ;;  %s2254_s29 = int_to_ptr.vmem [resolvable:$true] %s2253_s29 }
  0x27   :  { %2552 = vmatprep.subr.mxu1 %v3822_v3  ;;  %2563 = vmatprep.subr.mxu0 %v3822_v3  ;;  %s2976_s30 = scalar_lea.vmem %s2254_s29, 128  ;;  %p2981_p1 = scmp.lt.s32.totalorder %s2254_s29, %s2254_s29 }
  0x28   :  { %2553 = vmatpush3.msra.mxu1 %v3345_v8  ;;  %2564 = vmatpush3.msra.mxu0 %v3078_v16  ;;  %p2977_p0 = scmp.ne.s32.totalorder %s2254_s29, %s2976_s30  ;;  %p2982_p2 = scmp.lt.s32.totalorder %s2976_s30, %s2976_s30 }
  0x29   :  { %2554 = vmatprep.subr.mxu1 %v3822_v3  ;;  %2565 = vmatprep.subr.mxu0 %v3822_v3 }
  0x2a   :  { %2555 = vmatpush3.msra.mxu1 %v3352_v31  ;;  %2566 = vmatpush3.msra.mxu0 %v3083_v18  ;;  %p2983_p3 = por %p2982_p2, %p2981_p1 }
  0x2b   :  { %2556 = vmatprep.subr.mxu1 %v3822_v3  ;;  %2567 = vmatprep.subr.mxu0 %v3822_v3 }
  0x2c   :  { %2557 = vmatpush3.msra.mxu1 %v3358_v45  ;;  %2568 = vmatpush3.msra.mxu0 %v3090_v20  ;;  %p2984_p4 = pnand %p2983_p3, %p2977_p0 }
  0x2d   :  { %2559 = vmatmul.mubr.f32.vlgmr.msra.gmra.mxu1 %v3245_v26  ;;  %2569 = vmatprep.subr.mxu0 %v3822_v3 }
  0x2e   :  { %2596 = vmatprep.subr.mxu1 %v3822_v3  ;;  %2570 = vmatpush3.msra.mxu0 %v3093_v21 }
  0x2f   :  { %2597 = vmatpush3.msra.mxu1 %v3041_v4  ;;  %2571 = vmatprep.subr.mxu0 %v3822_v3 }
  0x30   :  { %2598 = vmatprep.subr.mxu1 %v3822_v3  ;;  %2572 = vmatpush3.msra.mxu0 %v3120_v30 }
  0x31   :  { %2599 = vmatpush3.msra.mxu1 %v3043_v5  ;;  %2573 = vmatprep.subr.mxu0 %v3822_v3 }
  0x32   :  { %2600 = vmatprep.subr.mxu1 %v3822_v3  ;;  %2574 = vmatpush3.msra.mxu0 %v3133_v35 }
  0x33   :  { %2601 = vmatpush3.msra.mxu1 %v3045_v6  ;;  %2575 = vmatprep.subr.mxu0 %v3822_v3 }
  0x34   :  { %2602 = vmatprep.subr.mxu1 %v3822_v3  ;;  %2576 = vmatpush3.msra.mxu0 %v3155_v43 }
  0x35   :  { %2603 = vmatpush3.msra.mxu1 %v3057_v10  ;;  %2577 = vmatprep.subr.mxu0 %v3822_v3 }
  0x36   :  { %2604 = vmatprep.subr.mxu1 %v3822_v3  ;;  %2578 = vmatpush3.msra.mxu0 %v3167_v47 }
  0x37   :  { %2605 = vmatpush3.msra.mxu1 %v3059_v11  ;;  %2579 = vmatprep.subr.mxu0 %v3822_v3 }
  0x38   :  { %2606 = vmatprep.subr.mxu1 %v3822_v3  ;;  %2580 = vmatpush3.msra.mxu0 %v3195_v56 }
  0x39   :  { %2607 = vmatpush3.msra.mxu1 %v3061_v12  ;;  %2581 = vmatprep.subr.mxu0 %v3822_v3 }
  0x3a   :  { %2608 = vmatprep.subr.mxu1 %v3822_v3  ;;  %2582 = vmatpush3.msra.mxu0 %v3214_v63 }
  0x3b   :  { %2609 = vmatpush3.msra.mxu1 %v3080_v17  ;;  %2583 = vmatprep.subr.mxu0 %v3822_v3 }
  0x3c   :  { %2610 = vmatprep.subr.mxu1 %v3822_v3  ;;  %2584 = vmatpush3.msra.mxu0 %v3238_v14 }
  0x3d   :  { %2611 = vmatpush3.msra.mxu1 %v3105_v25  ;;  %2585 = vmatprep.subr.mxu0 %v3822_v3 }
  0x3e   :  { %2612 = vmatprep.subr.mxu1 %v3822_v3  ;;  %2586 = vmatpush3.msra.mxu0 %v3257_v34 }
  0x3f   :  { %2613 = vmatpush3.msra.mxu1 %v3114_v28  ;;  %2587 = vmatprep.subr.mxu0 %v3822_v3 }
  0x40   :  { %2614 = vmatprep.subr.mxu1 %v3822_v3  ;;  %2588 = vmatpush3.msra.mxu0 %v3277_v51 }
  0x41   :  { %2615 = vmatpush3.msra.mxu1 %v3136_v36  ;;  %2589 = vmatprep.subr.mxu0 %v3822_v3 }
  0x42   :  { %2616 = vmatprep.subr.mxu1 %v3822_v3  ;;  %2590 = vmatpush3.msra.mxu0 %v3292_v55 }
  0x43   :  { %2617 = vmatpush3.msra.mxu1 %v3152_v42  ;;  %2591 = vmatprep.subr.mxu0 %v3822_v3 }
  0x44   :  { %2618 = vmatprep.subr.mxu1 %v3822_v3  ;;  %2592 = vmatpush3.msra.mxu0 %v3306_v2 }
  0x45   :  { %2593 = vmatprep.mubr.msk.f32.mxu0 %vm2999_vm0, %v3822_v3  ;;  %2619 = vmatpush3.msra.mxu1 %v3177_v50 }
  0x46   :  { %2594 = vmatmul.mubr.f32.vlgmr.msra.gmra.mxu0 %v3265_v41  ;;  %2620 = vmatprep.subr.mxu1 %v3822_v3  ;;  %v703_v41 = vsel %vm701_vm1, %v54_v7, 0 }
  0x47   :  { %2631 = vmatprep.subr.mxu0 %v3822_v3  ;;  %2621 = vmatpush3.msra.mxu1 %v3211_v62  ;;  %v3512_v53 = vand.u32 4294901760, %v703_v41 }
  0x48   :  { %2632 = vmatpush3.msra.mxu0 %v3097_v22  ;;  %2622 = vmatprep.subr.mxu1 %v3822_v3 }
  0x49   :  { %2633 = vmatprep.subr.mxu0 %v3822_v3  ;;  %2623 = vmatpush3.msra.mxu1 %v3218_v0  ;;  %v3515_v19 = vsub.f32 %v703_v41, %v3512_v53 }
  0x4a   :  { %2634 = vmatpush3.msra.mxu0 %v3100_v23  ;;  %2624 = vmatprep.subr.mxu1 %v3822_v3 }
  0x4b   :  { %2635 = vmatprep.subr.mxu0 %v3822_v3  ;;  %2625 = vmatpush3.msra.mxu1 %v3251_v32 }
  0x4c   :  { %2636 = vmatpush3.msra.mxu0 %v3103_v24  ;;  %2626 = vmatprep.subr.mxu1 %v3822_v3 }
  0x4d   :  { %2637 = vmatprep.subr.mxu0 %v3822_v3  ;;  %2627 = vmatpush3.msra.mxu1 %v3261_v39 }
  0x4e   :  { %2628 = vmatprep.mubr.msk.f32.mxu1 %vm2999_vm0, %v3822_v3  ;;  %2638 = vmatpush3.msra.mxu0 %v3112_v27 }
  0x4f   :  { %2629 = vmatmul.mubr.f32.vlgmr.msra.gmra.mxu1 %v3850_v52  ;;  %2639 = vmatprep.subr.mxu0 %v3822_v3 }
  0x50   :  { %2666 = vmatprep.subr.mxu1 %v3822_v3  ;;  %2640 = vmatpush3.msra.mxu0 %v3117_v29 }
  0x51   :  { %2667 = vmatpush3.msra.mxu1 %v3041_v4  ;;  %2641 = vmatprep.subr.mxu0 %v3822_v3 }
  0x52   :  { %2668 = vmatprep.subr.mxu1 %v3822_v3  ;;  %2642 = vmatpush3.msra.mxu0 %v3146_v40 }
  0x53   :  { %2669 = vmatpush3.msra.mxu1 %v3043_v5  ;;  %2643 = vmatprep.subr.mxu0 %v3822_v3 }
  0x54   :  { %2670 = vmatprep.subr.mxu1 %v3822_v3  ;;  %2644 = vmatpush3.msra.mxu0 %v3164_v46 }
  0x55   :  { %2671 = vmatpush3.msra.mxu1 %v3045_v6  ;;  %2645 = vmatprep.subr.mxu0 %v3822_v3 }
  0x56   :  { %2672 = vmatprep.subr.mxu1 %v3822_v3  ;;  %2646 = vmatpush3.msra.mxu0 %v3189_v54 }
  0x57   :  { %2673 = vmatpush3.msra.mxu1 %v3057_v10  ;;  %2647 = vmatprep.subr.mxu0 %v3822_v3 }
  0x58   :  { %2674 = vmatprep.subr.mxu1 %v3822_v3  ;;  %2648 = vmatpush3.msra.mxu0 %v3203_v58 }
  0x59   :  { %2675 = vmatpush3.msra.mxu1 %v3059_v11  ;;  %2649 = vmatprep.subr.mxu0 %v3822_v3 }
  0x5a   :  { %2676 = vmatprep.subr.mxu1 %v3822_v3  ;;  %2650 = vmatpush3.msra.mxu0 %v3232_v9 }
  0x5b   :  { %2677 = vmatpush3.msra.mxu1 %v3061_v12  ;;  %2651 = vmatprep.subr.mxu0 %v3822_v3 }
  0x5c   :  { %2678 = vmatprep.subr.mxu1 %v3822_v3  ;;  %2652 = vmatpush3.msra.mxu0 %v3254_v33 }
  0x5d   :  { %2679 = vmatpush3.msra.mxu1 %v3080_v17  ;;  %2653 = vmatprep.subr.mxu0 %v3822_v3 }
  0x5e   :  { %2680 = vmatprep.subr.mxu1 %v3822_v3  ;;  %2654 = vmatpush3.msra.mxu0 %v3274_v49 }
  0x5f   :  { %2681 = vmatpush3.msra.mxu1 %v3105_v25  ;;  %2655 = vmatprep.subr.mxu0 %v3822_v3 }
  0x60   :  { %2682 = vmatprep.subr.mxu1 %v3822_v3  ;;  %2656 = vmatpush3.msra.mxu0 %v3289_v61 }
  0x61   :  { %2683 = vmatpush3.msra.mxu1 %v3114_v28  ;;  %2657 = vmatprep.subr.mxu0 %v3822_v3 }
  0x62   :  { %2684 = vmatprep.subr.mxu1 %v3822_v3  ;;  %2658 = vmatpush3.msra.mxu0 %v3303_v59 }
  0x63   :  { %2685 = vmatpush3.msra.mxu1 %v3136_v36  ;;  %2659 = vmatprep.subr.mxu0 %v3822_v3 }
  0x64   :  { %2686 = vmatprep.subr.mxu1 %v3822_v3  ;;  %2660 = vmatpush3.msra.mxu0 %v3320_v13 }
  0x65   :  { %2687 = vmatpush3.msra.mxu1 %v3152_v42  ;;  %2661 = vmatprep.subr.mxu0 %v3822_v3 }
  0x66   :  { %2688 = vmatprep.subr.mxu1 %v3822_v3  ;;  %2662 = vmatpush3.msra.mxu0 %v3331_v48 }
  0x67   :  { %2663 = vmatprep.mubr.msk.f32.mxu0 %vm2999_vm0, %v3822_v3  ;;  %2689 = vmatpush3.msra.mxu1 %v3177_v50 }
  0x68   :  { %2664 = vmatmul.mubr.f32.vlgmr.msra.gmra.mxu0 %v3245_v26  ;;  %2690 = vmatprep.subr.mxu1 %v3822_v3 }
  0x69   :  { %2698 = vmatprep.mubr.msk.f32.mxu1 %vm2999_vm0, %v3822_v3  ;;  %2691 = vmatpush3.msra.mxu1 %v3211_v62 }
  0x6a   :  { %2701 = vmatprep.subr.mxu0 %v3822_v3  ;;  %2692 = vmatprep.subr.mxu1 %v3822_v3 }
  0x6b   :  { %2703 = vmatprep.mubr.msk.f32.mxu0 %vm2999_vm0, %v3822_v3  ;;  %2693 = vmatpush3.msra.mxu1 %v3218_v0 }
  0x6c   :  { %2694 = vmatprep.subr.mxu1 %v3822_v3  ;;  %2702 = vmatpush3.msra.mxu0 %v3512_v53 }
  0x6d   :  { %2695 = vmatpush3.msra.mxu1 %v3251_v32  ;;  %2711 = vmatprep.subr.mxu0 %v3822_v3 }
  0x6e   :  { %2696 = vmatprep.subr.mxu1 %v3822_v3 }
  0x6f   :  { %2697 = vmatpush3.msra.mxu1 %v3261_v39 }
  0x70   :  { %2699 = vmatmul.mubr.f32.vlgmr.msra.gmra.mxu1 %v3245_v26  ;;  %2706 = vmatprep.subr.mxu1 %v3822_v3  ;;  %v3520_v26 = vand.u32 4294901760, %v3515_v19 }
  0x71   :  { %2708 = vmatprep.mubr.msk.f32.mxu1 %vm2999_vm0, %v3822_v3 }
  0x72   :  { %v815_v52 = vsub.f32 %v3515_v19, %v3520_v26 }
  0x74   :  { %v3524_v48 = vand.u32 4294901760, %v815_v52 }
  0x76   :  { %3851 = vst [vmem:[#allocation29_spill] sm:$0xff] %v3524_v48  ;;  %2707 = vmatpush3.msra.mxu1 %v3524_v48 }
  0x77   :  { %2716 = vmatprep.subr.mxu1 %v3822_v3 }
  0xe5   :  { %v142_v7 = vpop.f32.mrf.mxu0 }
  0xe7   :  { %v2525_v13 = vpop.f32.mrf.mxu0 }
  0xed   :  { %v293_v41 = vpop.f32.mrf.mxu1 }
  0xee   :  { %v294_v54 = vadd.f32 %v293_v41, %v142_v7 }
  0xef   :  { %v2560_v59 = vpop.f32.mrf.mxu1 }
 0x106   :  { %v397_v61 = vpop.f32.mrf.mxu0 }
 0x107   :  { %v398_v40 = vadd.f32 %v397_v61, %v294_v54 }
 0x108   :  { %v2595_v49 = vpop.f32.mrf.mxu0 }
 0x109   :  { %v3852_v49 = vmov 0.0  }
 0x10f   :  { %v486_v33 = vpop.f32.mrf.mxu1 }
 0x110   :  { %v487_v29 = vadd.f32 %v486_v33, %v398_v40  ;;  %v3859_v40 = vld [vmem:[#allocation25_spill] sm:$0xff] }
 0x111   :  { %v2630_v9 = vpop.f32.mrf.mxu1 }
 0x128   :  { %v605_v58 = vpop.f32.mrf.mxu0 }
 0x129   :  { %v606_v27 = vadd.f32 %v605_v58, %v487_v29 }
 0x12a   :  { %v2665_v46 = vpop.f32.mrf.mxu0 }
 0x130   :  { %v692_v52 = vpop.f32.mrf.mxu1 }
 0x131   :  { %v693_v24 = vadd.f32 %v692_v52, %v606_v27  ;;  %v3856_v27 = vld [vmem:[#allocation19_spill] sm:$0xff] }
 0x132   :  { %v2700_v48 = vpop.f32.mrf.mxu1 }
 0x133   :  { %v696_v23 = vmul.f32 0.03125, %v693_v24 }
 0x135   :  { %v699_v3 = vsel %vm697_vm2, %v696_v23, 0  ;;  %v3855_v23 = vld [vmem:[#allocation17_spill] sm:$0xff] }
 0x136   :  { %v771_v13 = vand.u32 4294901760, %v699_v3 }
 0x138   :  { %v772_v22 = vsub.f32 %v699_v3, %v771_v13  ;;  %2709 = vmatmul.mubr.f32.vlgmr.msra.gmra.mxu1 %v771_v13  ;;  %v3853_v3 = vld [vmem:[#allocation12_spill] sm:$0xff] }
 0x139   :  { %2717 = vmatpush3.msra.mxu1 %v3512_v53  ;;  %2718 = vmatprep.mubr.msk.f32.mxu1 %vm2999_vm0, %v3852_v49 }
 0x13a   :  { %v773_v9 = vand.u32 4294901760, %v772_v22  ;;  %2726 = vmatprep.subr.mxu1 %v3852_v49 }
 0x13c   :  { %2719 = vmatmul.mubr.f32.vlgmr.msra.gmra.mxu1 %v773_v9  ;;  %v774_v29 = vsub.f32 %v772_v22, %v773_v9 }
 0x13d   :  { %2727 = vmatpush3.msra.mxu1 %v3512_v53  ;;  %2728 = vmatprep.mubr.msk.f32.mxu1 %vm2999_vm0, %v3852_v49 }
 0x13e   :  { %v775_v24 = vand.u32 4294901760, %v774_v29  ;;  %2766 = vmatprep.subr.mxu1 %v3852_v49 }
 0x140   :  { %2704 = vmatmul.mubr.f32.vlgmr.msra.gmra.mxu0 %v775_v24  ;;  %2729 = vmatmul.mubr.f32.vlgmr.msra.gmra.mxu1 %v771_v13 }
 0x141   :  { %2712 = vmatpush3.msra.mxu0 %v3515_v19  ;;  %2713 = vmatprep.mubr.msk.f32.mxu0 %vm2999_vm0, %v3852_v49 }
 0x142   :  { %2721 = vmatprep.subr.mxu0 %v3852_v49  ;;  %2767 = vmatpush3.msra.mxu1 %v3139_v37  ;;  %v3857_v37 = vld [vmem:[#allocation21_spill] sm:$0xff] }
 0x143   :  { %2768 = vmatprep.subr.mxu1 %v3852_v49  ;;  %2798 = vmatprep.mubr.msk.f32.mxu1 %vm2999_vm0, %v3852_v49 }
 0x144   :  { %2714 = vmatmul.mubr.f32.vlgmr.msra.gmra.mxu0 %v772_v22  ;;  %2769 = vmatpush3.msra.mxu1 %v3141_v38  ;;  %v3854_v22 = vld [vmem:[#allocation15_spill] sm:$0xff] }
 0x145   :  { %2722 = vmatpush3.msra.mxu0 %v3520_v26  ;;  %2723 = vmatprep.mubr.msk.f32.mxu0 %vm2999_vm0, %v3852_v49  ;;  %v3858_v38 = vld [vmem:[#allocation23_spill] sm:$0xff] }
 0x146   :  { %2770 = vmatprep.subr.mxu1 %v3852_v49  ;;  %2731 = vmatprep.subr.mxu0 %v3852_v49 }
 0x147   :  { %2771 = vmatpush3.msra.mxu1 %v3159_v44 }
 0x148   :  { %2724 = vmatmul.mubr.f32.vlgmr.msra.gmra.mxu0 %v771_v13  ;;  %2772 = vmatprep.subr.mxu1 %v3852_v49  ;;  %v3860_v13 = vld [vmem:[#allocation16_spill] sm:$0xff] }
 0x149   :  { %2773 = vmatpush3.msra.mxu1 %v3853_v3  ;;  %2732 = vmatpush3.msra.mxu0 %v3041_v4 }
 0x14a   :  { %2774 = vmatprep.subr.mxu1 %v3852_v49  ;;  %2733 = vmatprep.subr.mxu0 %v3852_v49 }
 0x14b   :  { %2775 = vmatpush3.msra.mxu1 %v3854_v22  ;;  %2734 = vmatpush3.msra.mxu0 %v3043_v5 }
 0x14c   :  { %2776 = vmatprep.subr.mxu1 %v3852_v49  ;;  %2735 = vmatprep.subr.mxu0 %v3852_v49 }
 0x14d   :  { %2777 = vmatpush3.msra.mxu1 %v3855_v23  ;;  %2736 = vmatpush3.msra.mxu0 %v3045_v6 }
 0x14e   :  { %2778 = vmatprep.subr.mxu1 %v3852_v49  ;;  %2737 = vmatprep.subr.mxu0 %v3852_v49 }
 0x14f   :  { %2779 = vmatpush3.msra.mxu1 %v3856_v27  ;;  %2738 = vmatpush3.msra.mxu0 %v3057_v10 }
 0x150   :  { %2780 = vmatprep.subr.mxu1 %v3852_v49  ;;  %2739 = vmatprep.subr.mxu0 %v3852_v49 }
 0x151   :  { %2781 = vmatpush3.msra.mxu1 %v3857_v37  ;;  %2740 = vmatpush3.msra.mxu0 %v3059_v11 }
 0x152   :  { %2782 = vmatprep.subr.mxu1 %v3852_v49  ;;  %2741 = vmatprep.subr.mxu0 %v3852_v49 }
 0x153   :  { %2783 = vmatpush3.msra.mxu1 %v3858_v38  ;;  %2742 = vmatpush3.msra.mxu0 %v3061_v12 }
 0x154   :  { %2784 = vmatprep.subr.mxu1 %v3852_v49  ;;  %2743 = vmatprep.subr.mxu0 %v3852_v49 }
 0x155   :  { %2785 = vmatpush3.msra.mxu1 %v3859_v40  ;;  %2744 = vmatpush3.msra.mxu0 %v3080_v17 }
 0x156   :  { %2786 = vmatprep.subr.mxu1 %v3852_v49  ;;  %2745 = vmatprep.subr.mxu0 %v3852_v49 }
 0x157   :  { %2787 = vmatpush3.msra.mxu1 %v3312_v1  ;;  %2746 = vmatpush3.msra.mxu0 %v3105_v25 }
 0x158   :  { %2788 = vmatprep.subr.mxu1 %v3852_v49  ;;  %2747 = vmatprep.subr.mxu0 %v3852_v49 }
 0x159   :  { %2789 = vmatpush3.msra.mxu1 %v3326_v57  ;;  %2748 = vmatpush3.msra.mxu0 %v3114_v28 }
 0x15a   :  { %2790 = vmatprep.subr.mxu1 %v3852_v49  ;;  %2749 = vmatprep.subr.mxu0 %v3852_v49 }
 0x15b   :  { %2791 = vmatpush3.msra.mxu1 %v3337_v60  ;;  %2750 = vmatpush3.msra.mxu0 %v3136_v36 }
 0x15c   :  { %2792 = vmatprep.subr.mxu1 %v3852_v49  ;;  %2751 = vmatprep.subr.mxu0 %v3852_v49 }
 0x15d   :  { %2793 = vmatpush3.msra.mxu1 %v3345_v8  ;;  %2752 = vmatpush3.msra.mxu0 %v3152_v42 }
 0x15e   :  { %2794 = vmatprep.subr.mxu1 %v3852_v49  ;;  %2753 = vmatprep.subr.mxu0 %v3852_v49 }
 0x15f   :  { %2795 = vmatpush3.msra.mxu1 %v3352_v31  ;;  %2754 = vmatpush3.msra.mxu0 %v3177_v50 }
 0x160   :  { %2796 = vmatprep.subr.mxu1 %v3852_v49  ;;  %2755 = vmatprep.subr.mxu0 %v3852_v49 }
 0x161   :  { %2797 = vmatpush3.msra.mxu1 %v3358_v45  ;;  %2756 = vmatpush3.msra.mxu0 %v3211_v62 }
 0x162   :  { %2836 = vmatprep.subr.mxu1 %v3852_v49  ;;  %2757 = vmatprep.subr.mxu0 %v3852_v49 }
 0x163   :  { %2758 = vmatpush3.msra.mxu0 %v3218_v0  ;;  %2763 = vmatprep.mubr.msk.f32.mxu0 %vm2999_vm0, %v3852_v49 }
 0x164   :  { %2759 = vmatprep.subr.mxu0 %v3852_v49 }
 0x165   :  { %2760 = vmatpush3.msra.mxu0 %v3251_v32 }
 0x166   :  { %2761 = vmatprep.subr.mxu0 %v3852_v49 }
 0x167   :  { %2762 = vmatpush3.msra.mxu0 %v3261_v39 }
 0x168   :  { %2801 = vmatprep.subr.mxu0 %v3852_v49 }
 0x1f8   :  { %v853_v44 = vpop.f32.mrf.mxu1 }
 0x1fa   :  { %v2710_v46 = vpop.f32.mrf.mxu1 }
 0x1fc   :  { %v1001_v54 = vpop.f32.mrf.mxu1 }
 0x1fe   :  { %v2720_v58 = vpop.f32.mrf.mxu1 }
 0x200   :  { %v777_v60 = vpop.f32.mrf.mxu0  ;;  %v1147_v33 = vpop.f32.mrf.mxu1 }
 0x201   :  { %v854_v8 = vadd.f32 %v853_v44, %v777_v60 }
 0x202   :  { %v2705_v59 = vpop.f32.mrf.mxu0  ;;  %v2730_v61 = vpop.f32.mrf.mxu1 }
 0x204   :  { %v927_v1 = vpop.f32.mrf.mxu0 }
 0x205   :  { %v928_v57 = vadd.f32 %v927_v1, %v854_v8 }
 0x206   :  { %v2715_v48 = vpop.f32.mrf.mxu0 }
 0x207   :  { %v1002_v31 = vadd.f32 %v1001_v54, %v928_v57 }
 0x208   :  { %v1075_v45 = vpop.f32.mrf.mxu0 }
 0x209   :  { %v1076_v7 = vadd.f32 %v1075_v45, %v1002_v31 }
 0x20a   :  { %v2725_v41 = vpop.f32.mrf.mxu0 }
 0x20b   :  { %v1148_v52 = vadd.f32 %v1147_v33, %v1076_v7 }
 0x20d   :  { %v3614_v9 = vsub.f32 %v3860_v13, %v1148_v52 }
 0x20f   :  { %v1152_v29 = vmul.f32 %v3614_v9, %v3614_v9 }
 0x211   :  { %v3618_v24 = vand.u32 4294901760, %v1152_v29 }
 0x213   :  { %2799 = vmatmul.mubr.f32.vlgmr.msra.gmra.mxu1 %v3618_v24  ;;  %v3622_v3 = vsub.f32 %v1152_v29, %v3618_v24 }
 0x214   :  { %2837 = vmatpush3.msra.mxu1 %v3041_v4  ;;  %2868 = vmatprep.mubr.msk.f32.mxu1 %vm2999_vm0, %v3852_v49 }
 0x215   :  { %2838 = vmatprep.subr.mxu1 %v3852_v49  ;;  %v1236_v22 = vand.u32 4294901760, %v3622_v3 }
 0x216   :  { %2839 = vmatpush3.msra.mxu1 %v3043_v5 }
 0x217   :  { %2840 = vmatprep.subr.mxu1 %v3852_v49  ;;  %v1237_v23 = vsub.f32 %v3622_v3, %v1236_v22 }
 0x218   :  { %2841 = vmatpush3.msra.mxu1 %v3045_v6 }
 0x219   :  { %2842 = vmatprep.subr.mxu1 %v3852_v49  ;;  %v1238_v27 = vand.u32 4294901760, %v1237_v23 }
 0x21a   :  { %2843 = vmatpush3.msra.mxu1 %v3057_v10 }
 0x21b   :  { %2844 = vmatprep.subr.mxu1 %v3852_v49  ;;  %2764 = vmatmul.mubr.f32.vlgmr.msra.gmra.mxu0 %v1238_v27 }
 0x21c   :  { %2802 = vmatpush3.msra.mxu0 %v3075_v15  ;;  %2845 = vmatpush3.msra.mxu1 %v3059_v11  ;;  %v3867_v15 = vld [vmem:[#allocation11_spill] sm:$0xff] }
 0x21d   :  { %2803 = vmatprep.subr.mxu0 %v3852_v49  ;;  %2846 = vmatprep.subr.mxu1 %v3852_v49 }
 0x21e   :  { %2804 = vmatpush3.msra.mxu0 %v3078_v16  ;;  %2847 = vmatpush3.msra.mxu1 %v3061_v12  ;;  %v3868_v16 = vld [vmem:[#allocation13_spill] sm:$0xff] }
 0x21f   :  { %2805 = vmatprep.subr.mxu0 %v3852_v49  ;;  %2848 = vmatprep.subr.mxu1 %v3852_v49 }
 0x220   :  { %2806 = vmatpush3.msra.mxu0 %v3083_v18  ;;  %2849 = vmatpush3.msra.mxu1 %v3080_v17  ;;  %v3870_v18 = vld [vmem:[#allocation18_spill] sm:$0xff] }
 0x221   :  { %2807 = vmatprep.subr.mxu0 %v3852_v49  ;;  %2850 = vmatprep.subr.mxu1 %v3852_v49 }
 0x222   :  { %2808 = vmatpush3.msra.mxu0 %v3090_v20  ;;  %2851 = vmatpush3.msra.mxu1 %v3105_v25  ;;  %v3871_v20 = vld [vmem:[#allocation20_spill] sm:$0xff] }
 0x223   :  { %2809 = vmatprep.subr.mxu0 %v3852_v49  ;;  %2852 = vmatprep.subr.mxu1 %v3852_v49 }
 0x224   :  { %2810 = vmatpush3.msra.mxu0 %v3093_v21  ;;  %2853 = vmatpush3.msra.mxu1 %v3114_v28  ;;  %v3872_v21 = vld [vmem:[#allocation22_spill] sm:$0xff] }
 0x225   :  { %2811 = vmatprep.subr.mxu0 %v3852_v49  ;;  %2854 = vmatprep.subr.mxu1 %v3852_v49 }
 0x226   :  { %2812 = vmatpush3.msra.mxu0 %v3120_v30  ;;  %2855 = vmatpush3.msra.mxu1 %v3136_v36  ;;  %v3875_v30 = vld [vmem:[#allocation29_spill] sm:$0xff] }
 0x227   :  { %2813 = vmatprep.subr.mxu0 %v3852_v49  ;;  %2856 = vmatprep.subr.mxu1 %v3852_v49 }
 0x228   :  { %2814 = vmatpush3.msra.mxu0 %v3133_v35  ;;  %2857 = vmatpush3.msra.mxu1 %v3152_v42  ;;  %v3876_v35 = vld [vmem:[#allocation27_spill] sm:$0xff] }
 0x229   :  { %2815 = vmatprep.subr.mxu0 %v3852_v49  ;;  %2858 = vmatprep.subr.mxu1 %v3852_v49 }
 0x22a   :  { %2816 = vmatpush3.msra.mxu0 %v3155_v43  ;;  %2859 = vmatpush3.msra.mxu1 %v3177_v50 }
 0x22b   :  { %2817 = vmatprep.subr.mxu0 %v3852_v49  ;;  %2860 = vmatprep.subr.mxu1 %v3852_v49 }
 0x22c   :  { %2818 = vmatpush3.msra.mxu0 %v3167_v47  ;;  %2861 = vmatpush3.msra.mxu1 %v3211_v62 }
 0x22d   :  { %2819 = vmatprep.subr.mxu0 %v3852_v49  ;;  %2862 = vmatprep.subr.mxu1 %v3852_v49 }
 0x22e   :  { %2820 = vmatpush3.msra.mxu0 %v3195_v56  ;;  %2863 = vmatpush3.msra.mxu1 %v3218_v0 }
 0x22f   :  { %2821 = vmatprep.subr.mxu0 %v3852_v49  ;;  %2864 = vmatprep.subr.mxu1 %v3852_v49 }
 0x230   :  { %2822 = vmatpush3.msra.mxu0 %v3214_v63  ;;  %2865 = vmatpush3.msra.mxu1 %v3251_v32 }
 0x231   :  { %2823 = vmatprep.subr.mxu0 %v3852_v49  ;;  %2866 = vmatprep.subr.mxu1 %v3852_v49 }
 0x232   :  { %2824 = vmatpush3.msra.mxu0 %v3238_v14  ;;  %2867 = vmatpush3.msra.mxu1 %v3261_v39 }
 0x233   :  { %2825 = vmatprep.subr.mxu0 %v3852_v49  ;;  %2869 = vmatmul.mubr.f32.vlgmr.msra.gmra.mxu1 %v1236_v22 }
 0x234   :  { %2906 = vmatprep.subr.mxu1 %v3852_v49  ;;  %2826 = vmatpush3.msra.mxu0 %v3257_v34 }
 0x235   :  { %2907 = vmatpush3.msra.mxu1 %v3041_v4  ;;  %2827 = vmatprep.subr.mxu0 %v3852_v49  ;;  %v3861_v4 = vld [vmem:[#allocation5_spill] sm:$0xff] }
 0x236   :  { %2908 = vmatprep.subr.mxu1 %v3852_v49  ;;  %2828 = vmatpush3.msra.mxu0 %v3277_v51 }
 0x237   :  { %2909 = vmatpush3.msra.mxu1 %v3043_v5  ;;  %2829 = vmatprep.subr.mxu0 %v3852_v49  ;;  %v3862_v5 = vld [vmem:[#allocation6_spill] sm:$0xff] }
 0x238   :  { %2910 = vmatprep.subr.mxu1 %v3852_v49  ;;  %2830 = vmatpush3.msra.mxu0 %v3292_v55 }
 0x239   :  { %2911 = vmatpush3.msra.mxu1 %v3045_v6  ;;  %2831 = vmatprep.subr.mxu0 %v3852_v49  ;;  %v3863_v6 = vld [vmem:[#allocation7_spill] sm:$0xff] }
 0x23a   :  { %2912 = vmatprep.subr.mxu1 %v3852_v49  ;;  %2832 = vmatpush3.msra.mxu0 %v3306_v2 }
 0x23b   :  { %2833 = vmatprep.mubr.msk.f32.mxu0 %vm2999_vm0, %v3852_v49  ;;  %2913 = vmatpush3.msra.mxu1 %v3057_v10  ;;  %v3864_v10 = vld [vmem:[#allocation8_spill] sm:$0xff] }
 0x23c   :  { %2834 = vmatmul.mubr.f32.vlgmr.msra.gmra.mxu0 %v3622_v3  ;;  %2871 = vmatprep.subr.mxu0 %v3852_v49 }
 0x23d   :  { %2914 = vmatprep.subr.mxu1 %v3852_v49  ;;  %2872 = vmatpush3.msra.mxu0 %v3861_v4 }
 0x23e   :  { %2915 = vmatpush3.msra.mxu1 %v3059_v11  ;;  %2873 = vmatprep.subr.mxu0 %v3852_v49  ;;  %v3865_v11 = vld [vmem:[#allocation9_spill] sm:$0xff] }
 0x23f   :  { %2916 = vmatprep.subr.mxu1 %v3852_v49  ;;  %2874 = vmatpush3.msra.mxu0 %v3862_v5 }
 0x240   :  { %2917 = vmatpush3.msra.mxu1 %v3061_v12  ;;  %2875 = vmatprep.subr.mxu0 %v3852_v49  ;;  %v3866_v12 = vld [vmem:[#allocation10_spill] sm:$0xff] }
 0x241   :  { %2918 = vmatprep.subr.mxu1 %v3852_v49  ;;  %2876 = vmatpush3.msra.mxu0 %v3863_v6 }
 0x242   :  { %2919 = vmatpush3.msra.mxu1 %v3080_v17  ;;  %2877 = vmatprep.subr.mxu0 %v3852_v49  ;;  %v3869_v17 = vld [vmem:[#allocation14_spill] sm:$0xff] }
 0x243   :  { %2920 = vmatprep.subr.mxu1 %v3852_v49  ;;  %2878 = vmatpush3.msra.mxu0 %v3864_v10 }
 0x244   :  { %2921 = vmatpush3.msra.mxu1 %v3105_v25  ;;  %2879 = vmatprep.subr.mxu0 %v3852_v49  ;;  %v3873_v25 = vld [vmem:[#allocation24_spill] sm:$0xff] }
 0x245   :  { %2922 = vmatprep.subr.mxu1 %v3852_v49  ;;  %2880 = vmatpush3.msra.mxu0 %v3865_v11 }
 0x246   :  { %2923 = vmatpush3.msra.mxu1 %v3114_v28  ;;  %2881 = vmatprep.subr.mxu0 %v3852_v49  ;;  %v3874_v28 = vld [vmem:[#allocation26_spill] sm:$0xff] }
 0x247   :  { %2924 = vmatprep.subr.mxu1 %v3852_v49  ;;  %2882 = vmatpush3.msra.mxu0 %v3866_v12 }
 0x248   :  { %2925 = vmatpush3.msra.mxu1 %v3136_v36  ;;  %2883 = vmatprep.subr.mxu0 %v3852_v49  ;;  %v3877_v36 = vld [vmem:[#allocation28_spill] sm:$0xff] }
 0x249   :  { %2926 = vmatprep.subr.mxu1 %v3852_v49  ;;  %2884 = vmatpush3.msra.mxu0 %v3867_v15 }
 0x24a   :  { %2927 = vmatpush3.msra.mxu1 %v3152_v42  ;;  %2885 = vmatprep.subr.mxu0 %v3852_v49 }
 0x24b   :  { %2928 = vmatprep.subr.mxu1 %v3852_v49  ;;  %2886 = vmatpush3.msra.mxu0 %v3868_v16 }
 0x24c   :  { %2929 = vmatpush3.msra.mxu1 %v3177_v50  ;;  %2887 = vmatprep.subr.mxu0 %v3852_v49 }
 0x24d   :  { %2930 = vmatprep.subr.mxu1 %v3852_v49  ;;  %2888 = vmatpush3.msra.mxu0 %v3869_v17 }
 0x24e   :  { %2931 = vmatpush3.msra.mxu1 %v3211_v62  ;;  %2889 = vmatprep.subr.mxu0 %v3852_v49 }
 0x24f   :  { %2932 = vmatprep.subr.mxu1 %v3852_v49  ;;  %2890 = vmatpush3.msra.mxu0 %v3870_v18 }
 0x250   :  { %2933 = vmatpush3.msra.mxu1 %v3218_v0  ;;  %2891 = vmatprep.subr.mxu0 %v3852_v49 }
 0x251   :  { %2934 = vmatprep.subr.mxu1 %v3852_v49  ;;  %2892 = vmatpush3.msra.mxu0 %v3871_v20 }
 0x252   :  { %2935 = vmatpush3.msra.mxu1 %v3251_v32  ;;  %2893 = vmatprep.subr.mxu0 %v3852_v49 }
 0x253   :  { %2936 = vmatprep.subr.mxu1 %v3852_v49  ;;  %2894 = vmatpush3.msra.mxu0 %v3872_v21 }
 0x254   :  { %2937 = vmatpush3.msra.mxu1 %v3261_v39  ;;  %2938 = vmatprep.mubr.msk.f32.mxu1 %vm2999_vm0, %v3852_v49 }
 0x255   :  { %2895 = vmatprep.subr.mxu0 %v3852_v49  ;;  %2939 = vmatmul.mubr.f32.vlgmr.msra.gmra.mxu1 %v3618_v24 }
 0x256   :  { %2896 = vmatpush3.msra.mxu0 %v3873_v25  ;;  %2903 = vmatprep.mubr.msk.f32.mxu0 %vm2999_vm0, %v3852_v49 }
 0x257   :  { %2897 = vmatprep.subr.mxu0 %v3852_v49  ;;  %2946 = vmatprep.subr.mxu1 %v3852_v49 }
 0x258   :  { %2898 = vmatpush3.msra.mxu0 %v3874_v28  ;;  %2947 = vmatpush3.msra.mxu1 %v3875_v30 }
 0x259   :  { %2899 = vmatprep.subr.mxu0 %v3852_v49  ;;  %2948 = vmatprep.mubr.msk.f32.mxu1 %vm2999_vm0, %v3852_v49 }
 0x25a   :  { %2900 = vmatpush3.msra.mxu0 %v3876_v35  ;;  %2956 = vmatprep.subr.mxu1 %v3852_v49 }
 0x25b   :  { %2901 = vmatprep.subr.mxu0 %v3852_v49 }
 0x25c   :  { %2902 = vmatpush3.msra.mxu0 %v3877_v36 }
 0x25d   :  { %2904 = vmatmul.mubr.f32.vlgmr.msra.gmra.mxu0 %v3618_v24  ;;  %2941 = vmatprep.subr.mxu0 %v3852_v49 }
 0x25e   :  { %2942 = vmatpush3.msra.mxu0 %v3512_v53  ;;  %2943 = vmatprep.mubr.msk.f32.mxu0 %vm2999_vm0, %v3852_v49 }
 0x25f   :  { %2951 = vmatprep.subr.mxu0 %v3852_v49 }
 0x2d3   :  { %v1391_v42 = vpop.f32.mrf.mxu1 }
 0x2d5   :  { %v2800_v43 = vpop.f32.mrf.mxu1 }
 0x2db   :  { %v1240_v47 = vpop.f32.mrf.mxu0 }
 0x2dc   :  { %v1392_v14 = vadd.f32 %v1391_v42, %v1240_v47 }
 0x2dd   :  { %v2765_v50 = vpop.f32.mrf.mxu0 }
 0x2f3   :  { %v1584_v56 = vpop.f32.mrf.mxu1 }
 0x2f5   :  { %v2870_v62 = vpop.f32.mrf.mxu1 }
 0x2fc   :  { %v1495_v63 = vpop.f32.mrf.mxu0 }
 0x2fd   :  { %v1496_v34 = vadd.f32 %v1495_v63, %v1392_v14 }
 0x2fe   :  { %v2835_v0 = vpop.f32.mrf.mxu0 }
 0x2ff   :  { %v1585_v39 = vadd.f32 %v1584_v56, %v1496_v34 }
 0x315   :  { %v1790_v2 = vpop.f32.mrf.mxu1 }
 0x317   :  { %v2940_v32 = vpop.f32.mrf.mxu1 }
 0x31d   :  { %v1703_v51 = vpop.f32.mrf.mxu0 }
 0x31e   :  { %v1704_v55 = vadd.f32 %v1703_v51, %v1585_v39 }
 0x31f   :  { %v2905_v37 = vpop.f32.mrf.mxu0 }
 0x320   :  { %v1791_v38 = vadd.f32 %v1790_v2, %v1704_v55 }
 0x322   :  { %v1794_v40 = vmul.f32 0.03125, %v1791_v38 }
 0x324   :  { %v1796_v44 = vsel %vm697_vm2, %v1794_v40, 0 }
 0x325   :  { %v1864_v46 = vand.u32 4294901760, %v1796_v44 }
 0x327   :  { %v1865_v54 = vsub.f32 %v1796_v44, %v1864_v46  ;;  %2949 = vmatmul.mubr.f32.vlgmr.msra.gmra.mxu1 %v1864_v46 }
 0x328   :  { %2957 = vmatpush3.msra.mxu1 %v3512_v53  ;;  %2958 = vmatprep.mubr.msk.f32.mxu1 %vm2999_vm0, %v3852_v49 }
 0x329   :  { %v1866_v58 = vand.u32 4294901760, %v1865_v54  ;;  %2966 = vmatprep.subr.mxu1 %v3852_v49 }
 0x32b   :  { %2959 = vmatmul.mubr.f32.vlgmr.msra.gmra.mxu1 %v1866_v58  ;;  %v1867_v60 = vsub.f32 %v1865_v54, %v1866_v58 }
 0x32c   :  { %2967 = vmatpush3.msra.mxu1 %v3512_v53  ;;  %2968 = vmatprep.mubr.msk.f32.mxu1 %vm2999_vm0, %v3852_v49 }
 0x32d   :  { %v1868_v33 = vand.u32 4294901760, %v1867_v60 }
 0x32f   :  { %2944 = vmatmul.mubr.f32.vlgmr.msra.gmra.mxu0 %v1868_v33  ;;  %2969 = vmatmul.mubr.f32.vlgmr.msra.gmra.mxu1 %v1864_v46 }
 0x330   :  { %2952 = vmatpush3.msra.mxu0 %v3515_v19  ;;  %2953 = vmatprep.mubr.msk.f32.mxu0 %vm2999_vm0, %v3852_v49 }
 0x331   :  { %2961 = vmatprep.subr.mxu0 %v3852_v49 }
 0x333   :  { %2954 = vmatmul.mubr.f32.vlgmr.msra.gmra.mxu0 %v1865_v54 }
 0x334   :  { %2962 = vmatpush3.msra.mxu0 %v3520_v26  ;;  %2963 = vmatprep.mubr.msk.f32.mxu0 %vm2999_vm0, %v3852_v49 }
 0x337   :  { %2964 = vmatmul.mubr.f32.vlgmr.msra.gmra.mxu0 %v1864_v46 }
 0x3e7   :  { %v1946_v53 = vpop.f32.mrf.mxu1 }
 0x3e9   :  { %v2950_v59 = vpop.f32.mrf.mxu1 }
 0x3eb   :  { %v2094_v61 = vpop.f32.mrf.mxu1 }
 0x3ed   :  { %v2960_v8 = vpop.f32.mrf.mxu1 }
 0x3ef   :  { %v1870_v1 = vpop.f32.mrf.mxu0  ;;  %v2240_v57 = vpop.f32.mrf.mxu1 }
 0x3f0   :  { %v1871_v48 = vadd.f32 1e-05, %v1870_v1 }
 0x3f1   :  { %v2945_v19 = vpop.f32.mrf.mxu0  ;;  %v2970_v31 = vpop.f32.mrf.mxu1 }
 0x3f2   :  { %v1947_v45 = vadd.f32 %v1946_v53, %v1871_v48 }
 0x3f3   :  { %v2020_v7 = vpop.f32.mrf.mxu0 }
 0x3f4   :  { %v2021_v41 = vadd.f32 %v2020_v7, %v1947_v45 }
 0x3f5   :  { %v2955_v52 = vpop.f32.mrf.mxu0 }
 0x3f6   :  { %v2095_v13 = vadd.f32 %v2094_v61, %v2021_v41 }
 0x3f7   :  { %v2168_v29 = vpop.f32.mrf.mxu0 }
 0x3f8   :  { %v2169_v26 = vadd.f32 %v2168_v29, %v2095_v13 }
 0x3f9   :  { %v2965_v24 = vpop.f32.mrf.mxu0 }
 0x3fa   :  { %v2241_v3 = vadd.f32 %v2240_v57, %v2169_v26 }
 0x3fc   :  { %2974 = vrsqrt.f32 %v2241_v3 }
 0x409   :  { %v2975_v49 = vpop.eup %2974 }
 0x40a   :  { %v2245_v22 = vmul.f32 %v2975_v49, %v3614_v9 }
 0x40c   :  { %2246 = vst [vmem:[#allocation2] sm:$0xff] %v2245_v22 }
 0x40d   :  { %2987 = shalt.err (!%p2984_p4)
}
 0x40e   :  { %2256 = dma.vmem_to_hbm [thread:$0]  %s2254_s29, 128, %s3797_s5, [#allocation3]  }
 0x40f   :  { %2996 = dma.done.wait [#allocation3], 128  }
 0x410   :  { %2997 = vsyncadd [#allocation3], 4294967168 }
 0x411   :  { %2260 = vsyncpa [#allocation3], 1 }

</bundles_post_ra>
